<compile_context>
chip_gen: v7x
topology: tpu7x:2x2x1
jax: 0.10.0
libtpu: 0.0.40
codegen_flags: <defaults>
</compile_context>

<pallas_src>
import numpy as np
import jax
import jax.numpy as jnp
from jax.experimental import pallas as pl
from jax.experimental.pallas import tpu as pltpu


def _e2g_kernel(x_ref, xt_ref, w_send_ref, w_recv_t_ref, b_out_ref,
                w_cat_ref, b_cat_ref, out_ref):
    # x_ref:        (BB, N, D)   batch tile, roi on sublanes (receiver layout)
    # xt_ref:       (BB, D, N)   batch tile, pre-transposed, roi on lanes (sender layout)
    # w_send_ref:   (D, D)       fc_out.weight[:, :D]
    # w_recv_t_ref: (D, D)       fc_out.weight[:, D:].T
    # b_out_ref:    (D, 1)       fc_out.bias as a column
    # w_cat_ref:    (D,)   SMEM  fc_cat.weight (read as scalars)
    # b_cat_ref:    (1,)   SMEM  fc_cat.bias
    # out_ref:      (BB, N, N)   out[b, i, j] edge grid (i = receiver, j = sender)
    bb, n, d_dim = x_ref.shape

    w_send = w_send_ref[...]
    w_recv_t = w_recv_t_ref[...]
    b_out_col = b_out_ref[...]          # (D, 1)
    b_cat = b_cat_ref[0]

    for b in range(bb):                 # BB is small and static; unrolled
        # Sender projection, j on lanes; fc_out bias folded in once.
        send_t = (jnp.dot(w_send, xt_ref[b],
                          preferred_element_type=jnp.float32)
                  + b_out_col)                                       # (D, N)
        # Receiver projection, i on sublanes.
        recv = jnp.dot(x_ref[b], w_recv_t,
                       preferred_element_type=jnp.float32)           # (N, D)

        # D-unrolled VPU accumulation of fc_cat(relu(...)) over the edge grid.
        # (For D >= 64 switch to lax.fori_loop(..., unroll=True) over d-chunks.)
        acc = jnp.zeros((n, n), dtype=jnp.float32)
        for d in range(d_dim):
            pair = recv[:, d:d + 1] + send_t[d:d + 1, :]             # (N, N)
            acc = acc + w_cat_ref[d] * jnp.maximum(pair, 0.0)

        out_ref[b] = jnp.maximum(acc + b_cat, 0.0)


@jax.jit
def embed2graph_by_linear(x, w_out, b_out, w_cat, b_cat):
    """x: (B, N, D); w_out: (D, 2D) fc_out.weight; b_out: (D,) fc_out.bias;
    w_cat: (1, D) fc_cat.weight; b_cat: (1,) fc_cat.bias.  Returns (B, N, N, 1)."""
    B, N, D = x.shape

    # min(B, 2) grid steps: >= 2 keeps both v7x TensorCores busy; collapsing
    # larger batches into the block keeps v5e/v6e's serial per-step cost bounded.
    n_steps = 2 if B >= 2 else 1
    bb = pl.cdiv(B, n_steps)
    b_pad = n_steps * bb

    x = x.astype(jnp.float32)
    if b_pad > B:
        # Padded batch rows produce finite garbage and are sliced off below.
        x = jnp.pad(x, ((0, b_pad - B), (0, 0), (0, 0)))
    xt = jnp.transpose(x, (0, 2, 1))                          # (b_pad, D, N)

    # Weight prep (precompute once outside if weights are reused across calls).
    w_send = w_out[:, :D].astype(jnp.float32)                 # (D, D)
    w_recv_t = w_out[:, D:].T.astype(jnp.float32)             # (D, D)
    b_out_col = b_out.reshape(D, 1).astype(jnp.float32)       # (D, 1)
    w_cat1 = w_cat.reshape(D).astype(jnp.float32)             # SMEM scalars
    b_cat1 = b_cat.reshape(1).astype(jnp.float32)             # SMEM scalar

    out = pl.pallas_call(
        _e2g_kernel,
        out_shape=jax.ShapeDtypeStruct((b_pad, N, N), jnp.float32),
        grid=(n_steps,),
        in_specs=[
            pl.BlockSpec((bb, N, D), lambda g: (g, 0, 0)),
            pl.BlockSpec((bb, D, N), lambda g: (g, 0, 0)),
            pl.BlockSpec((D, D), lambda g: (0, 0)),
            pl.BlockSpec((D, D), lambda g: (0, 0)),
            pl.BlockSpec((D, 1), lambda g: (0, 0)),
            pl.BlockSpec(memory_space=pltpu.MemorySpace.SMEM),
            pl.BlockSpec(memory_space=pltpu.MemorySpace.SMEM),
        ],
        out_specs=pl.BlockSpec((bb, N, N), lambda g: (g, 0, 0)),
        compiler_params=pltpu.CompilerParams(
            dimension_semantics=("parallel",)),
    )(x, xt, w_send, w_recv_t, b_out_col, w_cat1, b_cat1)

    # Drop batch padding (if any) and restore the module's (B, N, N, 1) shape.
    return out[:B, :, :, None]


def _reference(x, w_out, b_out, w_cat, b_cat):
    """Pure-JAX emulation of the PyTorch forward (explicit one-hot gather semantics)."""
    B, N, D = x.shape
    idx_i = jnp.repeat(jnp.arange(N), N)   # receiver index = e // N
    idx_j = jnp.tile(jnp.arange(N), N)     # sender   index = e % N
    receivers = x[:, idx_i, :]             # (B, N*N, D)
    senders = x[:, idx_j, :]               # (B, N*N, D)
    cat = jnp.concatenate([senders, receivers], axis=2)           # (B, N*N, 2D)
    h = jax.nn.relu(jnp.einsum("bef,df->bed", cat, w_out) + b_out)
    o = jax.nn.relu(jnp.einsum("bed,od->beo", h, w_cat) + b_cat)  # (B, N*N, 1)
    return o.reshape(B, N, N, 1)


if __name__ == "__main__":
    # Small shapes consistent with the module: batch=2, roi_num=16, input_dim=8.
    B, N, D = 2, 16, 8

    key = jax.random.PRNGKey(0)
    kx, k1, k2, k3, k4 = jax.random.split(key, 5)

    x = jax.random.normal(kx, (B, N, D), dtype=jnp.float32)

    # Deterministic PyTorch-Linear-style init (uniform(-1/sqrt(fan_in), 1/sqrt(fan_in))).
    bound_out = 1.0 / np.sqrt(2 * D)
    w_out = jax.random.uniform(k1, (D, 2 * D), jnp.float32, -bound_out, bound_out)  # fc_out.weight
    b_out = jax.random.uniform(k2, (D,), jnp.float32, -bound_out, bound_out)        # fc_out.bias
    bound_cat = 1.0 / np.sqrt(D)
    w_cat = jax.random.uniform(k3, (1, D), jnp.float32, -bound_cat, bound_cat)      # fc_cat.weight
    b_cat = jax.random.uniform(k4, (1,), jnp.float32, -bound_cat, bound_cat)        # fc_cat.bias

    m = embed2graph_by_linear(x, w_out, b_out, w_cat, b_cat)
    m = jax.block_until_ready(m)

    ref = _reference(x, w_out, b_out, w_cat, b_cat)
    assert m.shape == (B, N, N, 1)
    assert np.allclose(np.asarray(m), np.asarray(ref), atol=1e-5, rtol=1e-5)

    print("KERNEL_OK")
</pallas_src>

<mosaic_0001>
module attributes {stable_mosaic.version = 11 : i64} {
  func.func @_e2g_kernel(%arg0: i32, %arg1: memref<1x16x8xf32, #tpu.memory_space<vmem>>, %arg2: memref<1x8x16xf32, #tpu.memory_space<vmem>>, %arg3: memref<8x8xf32, #tpu.memory_space<vmem>>, %arg4: memref<8x8xf32, #tpu.memory_space<vmem>>, %arg5: memref<8x1xf32, #tpu.memory_space<vmem>>, %arg6: memref<8xf32, #tpu.memory_space<smem>>, %arg7: memref<1xf32, #tpu.memory_space<smem>>, %arg8: memref<1x16x16xf32, #tpu.memory_space<vmem>>) attributes {dimension_semantics = [#tpu.dimension_semantics<parallel>], iteration_bounds = array<i64: 2>, scalar_prefetch = 0 : i64, scratch_operands = 0 : i64, tpu.core_type = #tpu.core_type<tc>, window_params = [{transform_indices = @transform_0, window_bounds = array<i64: 1, 16, 8>}, {transform_indices = @transform_1, window_bounds = array<i64: 1, 8, 16>}, {pipeline_mode = #tpu.pipeline_mode<synchronous>, transform_indices = @transform_2, window_bounds = array<i64: 8, 8>}, {pipeline_mode = #tpu.pipeline_mode<synchronous>, transform_indices = @transform_3, window_bounds = array<i64: 8, 8>}, {pipeline_mode = #tpu.pipeline_mode<synchronous>, transform_indices = @transform_4, window_bounds = array<i64: 8, 1>}, {transform_indices = @transform_5, window_bounds = array<i64: 8>}, {transform_indices = @transform_6, window_bounds = array<i64: 1>}, {transform_indices = @transform_7, window_bounds = array<i64: 1, 16, 16>}]} {
    %c0 = arith.constant 0 : index
    %c0_0 = arith.constant 0 : index
    %0 = vector.load %arg3[%c0, %c0_0] : memref<8x8xf32, #tpu.memory_space<vmem>>, vector<8x8xf32>
    %c0_1 = arith.constant 0 : index
    %c0_2 = arith.constant 0 : index
    %1 = vector.load %arg4[%c0_1, %c0_2] : memref<8x8xf32, #tpu.memory_space<vmem>>, vector<8x8xf32>
    %c0_3 = arith.constant 0 : index
    %c0_4 = arith.constant 0 : index
    %2 = vector.load %arg5[%c0_3, %c0_4] : memref<8x1xf32, #tpu.memory_space<vmem>>, vector<8x1xf32>
    %c0_5 = arith.constant 0 : index
    %3 = memref.load %arg7[%c0_5] : memref<1xf32, #tpu.memory_space<smem>>
    %c0_6 = arith.constant 0 : index
    %c0_7 = arith.constant 0 : index
    %c0_8 = arith.constant 0 : index
    %4 = vector.load %arg2[%c0_6, %c0_7, %c0_8] : memref<1x8x16xf32, #tpu.memory_space<vmem>>, vector<1x8x16xf32>
    %5 = vector.shape_cast %4 : vector<1x8x16xf32> to vector<8x16xf32>
    %cst = arith.constant dense<0.000000e+00> : vector<8x16xf32>
    %6 = tpu.matmul %0, %5, %cst {dimension_numbers = #tpu.dot_dimension_numbers<[1], [0], [0], [1], [0, 0, 1, 1], [], []>} : vector<8x8xf32>, vector<8x16xf32>, vector<8x16xf32> -> vector<8x16xf32>
    %7 = vector.broadcast %2 : vector<8x1xf32> to vector<8x16xf32>
    %8 = arith.addf %6, %7 : vector<8x16xf32>
    %c0_9 = arith.constant 0 : index
    %c0_10 = arith.constant 0 : index
    %c0_11 = arith.constant 0 : index
    %9 = vector.load %arg1[%c0_9, %c0_10, %c0_11] : memref<1x16x8xf32, #tpu.memory_space<vmem>>, vector<1x16x8xf32>
    %10 = vector.shape_cast %9 : vector<1x16x8xf32> to vector<16x8xf32>
    %cst_12 = arith.constant dense<0.000000e+00> : vector<16x8xf32>
    %11 = tpu.matmul %10, %1, %cst_12 {dimension_numbers = #tpu.dot_dimension_numbers<[1], [0], [0], [1], [0, 0, 1, 1], [], []>} : vector<16x8xf32>, vector<8x8xf32>, vector<16x8xf32> -> vector<16x8xf32>
    %cst_13 = arith.constant 0.000000e+00 : f32
    %12 = vector.broadcast %cst_13 : f32 to vector<16x16xf32>
    %13 = vector.extract_strided_slice %11 {offsets = [0, 0], sizes = [16, 1], strides = [1, 1]} : vector<16x8xf32> to vector<16x1xf32>
    %14 = vector.extract_strided_slice %8 {offsets = [0, 0], sizes = [1, 16], strides = [1, 1]} : vector<8x16xf32> to vector<1x16xf32>
    %15 = vector.broadcast %13 : vector<16x1xf32> to vector<16x16xf32>
    %16 = vector.broadcast %14 : vector<1x16xf32> to vector<16x16xf32>
    %17 = arith.addf %15, %16 : vector<16x16xf32>
    %c0_14 = arith.constant 0 : index
    %18 = memref.load %arg6[%c0_14] : memref<8xf32, #tpu.memory_space<smem>>
    %cst_15 = arith.constant 0.000000e+00 : f32
    %19 = vector.broadcast %cst_15 : f32 to vector<16x16xf32>
    %20 = arith.maximumf %17, %19 : vector<16x16xf32>
    %21 = vector.broadcast %18 : f32 to vector<16x16xf32>
    %22 = arith.mulf %21, %20 : vector<16x16xf32>
    %23 = arith.addf %12, %22 : vector<16x16xf32>
    %24 = vector.extract_strided_slice %11 {offsets = [0, 1], sizes = [16, 1], strides = [1, 1]} : vector<16x8xf32> to vector<16x1xf32>
    %25 = vector.extract_strided_slice %8 {offsets = [1, 0], sizes = [1, 16], strides = [1, 1]} : vector<8x16xf32> to vector<1x16xf32>
    %26 = vector.broadcast %24 : vector<16x1xf32> to vector<16x16xf32>
    %27 = vector.broadcast %25 : vector<1x16xf32> to vector<16x16xf32>
    %28 = arith.addf %26, %27 : vector<16x16xf32>
    %c1 = arith.constant 1 : index
    %29 = memref.load %arg6[%c1] : memref<8xf32, #tpu.memory_space<smem>>
    %cst_16 = arith.constant 0.000000e+00 : f32
    %30 = vector.broadcast %cst_16 : f32 to vector<16x16xf32>
    %31 = arith.maximumf %28, %30 : vector<16x16xf32>
    %32 = vector.broadcast %29 : f32 to vector<16x16xf32>
    %33 = arith.mulf %32, %31 : vector<16x16xf32>
    %34 = arith.addf %23, %33 : vector<16x16xf32>
    %35 = vector.extract_strided_slice %11 {offsets = [0, 2], sizes = [16, 1], strides = [1, 1]} : vector<16x8xf32> to vector<16x1xf32>
    %36 = vector.extract_strided_slice %8 {offsets = [2, 0], sizes = [1, 16], strides = [1, 1]} : vector<8x16xf32> to vector<1x16xf32>
    %37 = vector.broadcast %35 : vector<16x1xf32> to vector<16x16xf32>
    %38 = vector.broadcast %36 : vector<1x16xf32> to vector<16x16xf32>
    %39 = arith.addf %37, %38 : vector<16x16xf32>
    %c2 = arith.constant 2 : index
    %40 = memref.load %arg6[%c2] : memref<8xf32, #tpu.memory_space<smem>>
    %cst_17 = arith.constant 0.000000e+00 : f32
    %41 = vector.broadcast %cst_17 : f32 to vector<16x16xf32>
    %42 = arith.maximumf %39, %41 : vector<16x16xf32>
    %43 = vector.broadcast %40 : f32 to vector<16x16xf32>
    %44 = arith.mulf %43, %42 : vector<16x16xf32>
    %45 = arith.addf %34, %44 : vector<16x16xf32>
    %46 = vector.extract_strided_slice %11 {offsets = [0, 3], sizes = [16, 1], strides = [1, 1]} : vector<16x8xf32> to vector<16x1xf32>
    %47 = vector.extract_strided_slice %8 {offsets = [3, 0], sizes = [1, 16], strides = [1, 1]} : vector<8x16xf32> to vector<1x16xf32>
    %48 = vector.broadcast %46 : vector<16x1xf32> to vector<16x16xf32>
    %49 = vector.broadcast %47 : vector<1x16xf32> to vector<16x16xf32>
    %50 = arith.addf %48, %49 : vector<16x16xf32>
    %c3 = arith.constant 3 : index
    %51 = memref.load %arg6[%c3] : memref<8xf32, #tpu.memory_space<smem>>
    %cst_18 = arith.constant 0.000000e+00 : f32
    %52 = vector.broadcast %cst_18 : f32 to vector<16x16xf32>
    %53 = arith.maximumf %50, %52 : vector<16x16xf32>
    %54 = vector.broadcast %51 : f32 to vector<16x16xf32>
    %55 = arith.mulf %54, %53 : vector<16x16xf32>
    %56 = arith.addf %45, %55 : vector<16x16xf32>
    %57 = vector.extract_strided_slice %11 {offsets = [0, 4], sizes = [16, 1], strides = [1, 1]} : vector<16x8xf32> to vector<16x1xf32>
    %58 = vector.extract_strided_slice %8 {offsets = [4, 0], sizes = [1, 16], strides = [1, 1]} : vector<8x16xf32> to vector<1x16xf32>
    %59 = vector.broadcast %57 : vector<16x1xf32> to vector<16x16xf32>
    %60 = vector.broadcast %58 : vector<1x16xf32> to vector<16x16xf32>
    %61 = arith.addf %59, %60 : vector<16x16xf32>
    %c4 = arith.constant 4 : index
    %62 = memref.load %arg6[%c4] : memref<8xf32, #tpu.memory_space<smem>>
    %cst_19 = arith.constant 0.000000e+00 : f32
    %63 = vector.broadcast %cst_19 : f32 to vector<16x16xf32>
    %64 = arith.maximumf %61, %63 : vector<16x16xf32>
    %65 = vector.broadcast %62 : f32 to vector<16x16xf32>
    %66 = arith.mulf %65, %64 : vector<16x16xf32>
    %67 = arith.addf %56, %66 : vector<16x16xf32>
    %68 = vector.extract_strided_slice %11 {offsets = [0, 5], sizes = [16, 1], strides = [1, 1]} : vector<16x8xf32> to vector<16x1xf32>
    %69 = vector.extract_strided_slice %8 {offsets = [5, 0], sizes = [1, 16], strides = [1, 1]} : vector<8x16xf32> to vector<1x16xf32>
    %70 = vector.broadcast %68 : vector<16x1xf32> to vector<16x16xf32>
    %71 = vector.broadcast %69 : vector<1x16xf32> to vector<16x16xf32>
    %72 = arith.addf %70, %71 : vector<16x16xf32>
    %c5 = arith.constant 5 : index
    %73 = memref.load %arg6[%c5] : memref<8xf32, #tpu.memory_space<smem>>
    %cst_20 = arith.constant 0.000000e+00 : f32
    %74 = vector.broadcast %cst_20 : f32 to vector<16x16xf32>
    %75 = arith.maximumf %72, %74 : vector<16x16xf32>
    %76 = vector.broadcast %73 : f32 to vector<16x16xf32>
    %77 = arith.mulf %76, %75 : vector<16x16xf32>
    %78 = arith.addf %67, %77 : vector<16x16xf32>
    %79 = vector.extract_strided_slice %11 {offsets = [0, 6], sizes = [16, 1], strides = [1, 1]} : vector<16x8xf32> to vector<16x1xf32>
    %80 = vector.extract_strided_slice %8 {offsets = [6, 0], sizes = [1, 16], strides = [1, 1]} : vector<8x16xf32> to vector<1x16xf32>
    %81 = vector.broadcast %79 : vector<16x1xf32> to vector<16x16xf32>
    %82 = vector.broadcast %80 : vector<1x16xf32> to vector<16x16xf32>
    %83 = arith.addf %81, %82 : vector<16x16xf32>
    %c6 = arith.constant 6 : index
    %84 = memref.load %arg6[%c6] : memref<8xf32, #tpu.memory_space<smem>>
    %cst_21 = arith.constant 0.000000e+00 : f32
    %85 = vector.broadcast %cst_21 : f32 to vector<16x16xf32>
    %86 = arith.maximumf %83, %85 : vector<16x16xf32>
    %87 = vector.broadcast %84 : f32 to vector<16x16xf32>
    %88 = arith.mulf %87, %86 : vector<16x16xf32>
    %89 = arith.addf %78, %88 : vector<16x16xf32>
    %90 = vector.extract_strided_slice %11 {offsets = [0, 7], sizes = [16, 1], strides = [1, 1]} : vector<16x8xf32> to vector<16x1xf32>
    %91 = vector.extract_strided_slice %8 {offsets = [7, 0], sizes = [1, 16], strides = [1, 1]} : vector<8x16xf32> to vector<1x16xf32>
    %92 = vector.broadcast %90 : vector<16x1xf32> to vector<16x16xf32>
    %93 = vector.broadcast %91 : vector<1x16xf32> to vector<16x16xf32>
    %94 = arith.addf %92, %93 : vector<16x16xf32>
    %c7 = arith.constant 7 : index
    %95 = memref.load %arg6[%c7] : memref<8xf32, #tpu.memory_space<smem>>
    %cst_22 = arith.constant 0.000000e+00 : f32
    %96 = vector.broadcast %cst_22 : f32 to vector<16x16xf32>
    %97 = arith.maximumf %94, %96 : vector<16x16xf32>
    %98 = vector.broadcast %95 : f32 to vector<16x16xf32>
    %99 = arith.mulf %98, %97 : vector<16x16xf32>
    %100 = arith.addf %89, %99 : vector<16x16xf32>
    %101 = vector.broadcast %3 : f32 to vector<16x16xf32>
    %102 = arith.addf %100, %101 : vector<16x16xf32>
    %cst_23 = arith.constant 0.000000e+00 : f32
    %103 = vector.broadcast %cst_23 : f32 to vector<16x16xf32>
    %104 = arith.maximumf %102, %103 : vector<16x16xf32>
    %c0_24 = arith.constant 0 : index
    %c0_25 = arith.constant 0 : index
    %c0_26 = arith.constant 0 : index
    %105 = vector.load %arg8[%c0_24, %c0_25, %c0_26] : memref<1x16x16xf32, #tpu.memory_space<vmem>>, vector<1x16x16xf32>
    %106 = vector.shape_cast %105 : vector<1x16x16xf32> to vector<16x16xf32>
    %107 = vector.shape_cast %104 : vector<16x16xf32> to vector<1x16x16xf32>
    tpu.vector_store %arg8[%c0_24, %c0_25, %c0_26], %107 {strides = array<i32>} : memref<1x16x16xf32, #tpu.memory_space<vmem>>, vector<1x16x16xf32>,
    return
  }
  func.func @transform_0(%arg0: i32) -> (i32, i32, i32) {
    %c0_i32 = arith.constant 0 : i32
    %c0_i32_0 = arith.constant 0 : i32
    %c0_i32_1 = arith.constant 0 : i32
    return %arg0, %c0_i32, %c0_i32_0 : i32, i32, i32
  }
  func.func @transform_1(%arg0: i32) -> (i32, i32, i32) {
    %c0_i32 = arith.constant 0 : i32
    %c0_i32_0 = arith.constant 0 : i32
    %c0_i32_1 = arith.constant 0 : i32
    return %arg0, %c0_i32, %c0_i32_0 : i32, i32, i32
  }
  func.func @transform_2(%arg0: i32) -> (i32, i32) {
    %c0_i32 = arith.constant 0 : i32
    %c0_i32_0 = arith.constant 0 : i32
    %c0_i32_1 = arith.constant 0 : i32
    return %c0_i32, %c0_i32_0 : i32, i32
  }
  func.func @transform_3(%arg0: i32) -> (i32, i32) {
    %c0_i32 = arith.constant 0 : i32
    %c0_i32_0 = arith.constant 0 : i32
    %c0_i32_1 = arith.constant 0 : i32
    return %c0_i32, %c0_i32_0 : i32, i32
  }
  func.func @transform_4(%arg0: i32) -> (i32, i32) {
    %c0_i32 = arith.constant 0 : i32
    %c0_i32_0 = arith.constant 0 : i32
    %c0_i32_1 = arith.constant 0 : i32
    return %c0_i32, %c0_i32_0 : i32, i32
  }
  func.func @transform_5(%arg0: i32) -> i32 {
    %c0_i32 = arith.constant 0 : i32
    %c0_i32_0 = arith.constant 0 : i32
    return %c0_i32 : i32
  }
  func.func @transform_6(%arg0: i32) -> i32 {
    %c0_i32 = arith.constant 0 : i32
    %c0_i32_0 = arith.constant 0 : i32
    return %c0_i32 : i32
  }
  func.func @transform_7(%arg0: i32) -> (i32, i32, i32) {
    %c0_i32 = arith.constant 0 : i32
    %c0_i32_0 = arith.constant 0 : i32
    %c0_i32_1 = arith.constant 0 : i32
    return %arg0, %c0_i32, %c0_i32_0 : i32, i32, i32
  }
}

</mosaic_0001>

<bundles_post_ra>
// kernel: embed2graph_by_linear.1
= control target key start
LH: loop header
LB: loop body
LE: loop exit
PB: predicated region body
PF: predicated region fallthrough
CT: control target
= control target key end

     0   :  { %s1233_s0 = inlined_call_operand.vmem [shape: f32[2,16,8], index: 0, kind: input, shape index: {}]   ;;  %s1234_s1 = inlined_call_operand.vmem [shape: f32[2,8,16], index: 1, kind: input, shape index: {}]   ;;  %s1235_s2 = inlined_call_operand.vmem [shape: f32[8,8], index: 2, kind: input, shape index: {}]   ;;  %s1236_s3 = inlined_call_operand.vmem [shape: f32[8,8], index: 3, kind: input, shape index: {}]   ;;  %s1237_s4 = inlined_call_operand.vmem [shape: f32[8,1], index: 4, kind: input, shape index: {}]   ;;  %s1238_s5 = inlined_call_operand.vmem [shape: f32[8], index: 5, kind: input, shape index: {}]   ;;  %s1239_s6 = inlined_call_operand.<no memory space> [shape: f32[1], index: 6, kind: input, shape index: {}]   ;;  %s1240_s7 = inlined_call_operand.hbm [shape: f32[2,16,16], index: 7, kind: output, shape index: {}]  }
   0x1   :  { %12 = sst [smem:[#allocation2]] %s1239_s6 }
   0x2   :  { %13 = vsyncpa [#allocation5], 0 }
   0x3   :  { %14 = vsyncpa [#allocation4], 0 }
   0x4   :  { %16 = vsyncpa [#allocation4 + $0x1], 0  ;;  %s1023_s26 = smov 0   ;;  %s1025_s27 = smov 0  }
   0x5   :  { %s1027_s28 = smov 0   ;;  %s1029_s29 = smov 0  }
   0x6 LB: > { %s1044_s6 = sadd.s32 4294967295, %s964_s29   ;;  %s762_s30 = sadd.s32 4294967294, %s964_s29   ;;  %s964_s29 = sphi %s1029_s29, %s1247_s29   ;;  %s960_s28 = sphi %s1027_s28, %s1246_s28   ;;  %s956_s27 = sphi %s1025_s27, %s1245_s27   ;;  %s952_s26 = sphi %s1023_s26, %s1244_s26  }
   0x7   : > { %s1048_s8 = sadd.s32 1, %s964_s29   ;;  %s186_s9 = sadd.s32 1, %s960_s28 }
   0x8   : > { %s183_s10 = ssub.s32 %s964_s29, %s1048_s8  ;;  %p196_p0 = scmp.ne.s32.totalorder %s960_s28, %s956_s27 }
   0x9   : > { %p184_p1 = scmp.eq.s32.totalorder %s183_s10, 0  ;;  %p197_p2 = scmp.eq.s32.totalorder %s1044_s6, 1 }
   0xa   : > { %p202_p3 = scmp.ne.s32.totalorder %s956_s27, %s952_s26  ;;  %p203_p4 = scmp.eq.s32.totalorder %s762_s30, 1 }
   0xb   : > { %s1059_s11 = scalar_select %p184_p1, %s960_s28, %s186_s9  }
   0xc   : > { %p1061_p5 = por %p197_p2, %p196_p0  ;;  %p1065_p6 = por %p203_p4, %p202_p3 }
   0xd   : > { %p763_p7 = scmp.ge.s32.totalorder %s964_s29, 1  ;;  %p210_p8 = scmp.lt.s32.totalorder %s964_s29, 3 }
   0xe   : > { %p818_p9 = scmp.eq.s32.totalorder %s1044_s6, 0  ;;  %s232_s17 = sshll.u32 %s1238_s5, 4  ;;  %s233_s17 = int_to_ptr.vmem [resolvable:$true] %s232_s17 }
   0xf   : > { %p1072_p10 = pnand %p763_p7, %p210_p8  ;;  %s883_s18 = scalar_lea.vmem %s233_s17, 16 }
  0x10   : > { %p884_p13 = scmp.ne.s32.totalorder %s233_s17, %s883_s18  ;;  %p891_p3 = scmp.lt.s32.totalorder %s233_s17, %s233_s17 }
  0x11   : > { %p810_p11 = pneg %p1072_p10  ;;  %p892_p4 = scmp.lt.s32.totalorder %s883_s18, %s883_s18 }
  0x13   : > { %p811_p12 = pnand %p818_p9, %p810_p11  ;;  %p893_p7 = por %p892_p4, %p891_p3 }
  0x15   : > { %p885_p0 = pneg %p811_p12 }
  0x17   : > { %p886_p1 = pnand %p885_p0, %p884_p13 }
  0x19   : > { %p887_p2 = pneg %p886_p1 }
  0x1b   : > { %p894_p8 = pnand %p893_p7, %p887_p2 }
  0x1d   : > { %897 = shalt.err (!%p894_p8)
}
  0x1e   : > { %s966_s19 = smov [#allocation3]   ;;  %263 = sbr.rel (%p1072_p10) target bundleno = 460 (0x1cc), region = 48 }
  0x1f   : > { %813 = dma.vmem_to_smem (!%p811_p12), %s233_s17, 16, %s966_s19, [#allocation5]  }
  0x25   : > { %943 = dma.done.wait (%p818_p9), [#allocation5], 16  }
  0x26   : > { %945 = vsyncadd (%p818_p9), [#allocation5], 4294967280 }
  0x27   : > { %269 = sfence }
  0x28   : > { %v310_v0 = vld [vmem:[%s1236_s3] sm:$0xff]  ;;  %p300_p11 = scmp.lt.s32.totalorder %s1044_s6, 1  ;;  %v967_v1 = vmov 0.0   ;;  %vm968_vm0 = vmmov 0   ;;  %v969_v3 = vmov 0   ;;  %vm319_vm1 = vcmask 64512  }
  0x29   : > { %799 = vmatprep.subr.mxu1 %v310_v0  ;;  %794 = vmatprep.subr.mxu0 %v967_v1  ;;  %v311_v2 = vld [vmem:[%s1237_s4] sm:$0xff]  ;;  %v970_v8 = vmov 1   ;;  %v971_v13 = vmov 4   ;;  %v972_v14 = vmov 2   ;;  %v973_v15 = vmov 3   ;;  %s1117_s20 = sld [smem:[#allocation3 + $0x1]] }
  0x2a   : > { %800 = vmatpush3.msra.mxu1 %v310_v0  ;;  %s301_s24 = scalar_select %p300_p11, %s1044_s6, 1  ;;  %796 = vmatprep.mubr.msk.f32.mxu0 %vm968_vm0, %v967_v1  ;;  %v309_v4 = vld [vmem:[%s1235_s2] sm:$0xff]  ;;  %v974_v16 = vmov 5   ;;  %v975_v17 = vmov 6   ;;  %v976_v18 = vmov 7   ;;  %v486_v19 = vlaneseq }
  0x2b   : > { %866 = vset.pattern.permute.xlu0 %v969_v3  ;;  %867 = vset.pattern.permute.xlu1 %v969_v3  ;;  %s1119_s21 = sld [smem:[#allocation3]]  ;;  %s1124_s22 = sld [smem:[#allocation3 + $0x2]]  ;;  %vm659_vm2 = vcmask 130048  }
  0x2c   : > { %s787_s25 = sshll.u32 %s301_s24, 4  ;;  %s771_s30 = sshll.u32 %s301_s24, 3  ;;  %316 = vperm.xlu0 %866, %v311_v2   ;;  %v1106_v20 = vshrl.u32 %v486_v19, 7 }
  0x2d   : > { %s304_s14 = scalar_lea.vmem %s1233_s0, %s787_s25  ;;  %s308_s17 = scalar_lea.vmem %s1234_s1, %s771_s30 }
  0x2e   : > { %v393_v5 = vld [vmem:[%s304_s14] sm:$0xff]  ;;  %v394_v6 = vld [vmem:[%s304_s14 + $0x8] sm:$0xff]  ;;  %v510_v23 = vsub.s32 1, %v1106_v20  ;;  %v488_v24 = vsub.s32 0, %v1106_v20  ;;  %v532_v25 = vsub.s32 2, %v1106_v20  ;;  %v554_v31 = vsub.s32 3, %v1106_v20 }
  0x2f   : > { %v313_v7 = vld [vmem:[%s308_s17] sm:$0xff]  ;;  %801 = vmatprep.mubr.msk.f32.mxu1 %vm319_vm1, %v393_v5  ;;  %s1128_s23 = sld [smem:[#allocation3 + $0x3]]  ;;  %v576_v36 = vsub.s32 4, %v1106_v20  ;;  %v598_v41 = vsub.s32 5, %v1106_v20  ;;  %v517_v42 = vstv %s1117_s20  ;;  %s1139_s24 = sld [smem:[#allocation3 + $0x4]]  ;;  %v620_v55 = vsub.s32 6, %v1106_v20 }
  0x30   : > { %795 = vmatpush3.msra.mxu0 %v313_v7  ;;  %802 = vmatmul.mubr.msk.f32.vlgmr.msra.gmra.mrb[0].mxu1 %vm319_vm1, %v394_v6  ;;  %s1148_s25 = sld [smem:[#allocation3 + $0x5]]  ;;  %s1152_s30 = sld [smem:[#allocation3 + $0x6]]  ;;  %v642_v7 = vsub.s32 7, %v1106_v20 }
  0x31   : > { %797 = vmatmul.mubr.msk.f32.vlgmr.msra.gmra.mrb[0].mxu0 %vm319_vm1, %v309_v4  ;;  %868 = vset.pattern.permute.xlu0 %v970_v8  ;;  %v495_v43 = vstv %s1119_s21  ;;  %v539_v48 = vstv %s1124_s22  ;;  %s1159_s9 = sld [smem:[#allocation3 + $0x7]]  ;;  %s1164_s10 = sld [smem:[#allocation2]] }
  0x32   : > { %s297_s14 = sand.u32 1, %s956_s27   ;;  %s788_s17 = sshll.u32 %s1044_s6, 8 }
  0x33   : > { %s768_s15 = sshll.u32 %s297_s14, 4  ;;  %s1185_s21 = scalar_lea.hbm %s1240_s7, %s788_s17 }
  0x34   : > { %s299_s16 = scalar_lea.vmem [#allocation6], %s768_s15  ;;  %s1192_s22 = scalar_lea.sflag [#allocation4], %s297_s14 }
  0x35   : > { %v561_v53 = vstv %s1128_s23  ;;  %v583_v2 = vstv %s1139_s24  ;;  %s676_s18 = sshll.u32 %s299_s16, 4  ;;  %s977_s6 = smov [#allocation6]   ;;  %s1187_s18 = int_to_ptr.vmem [resolvable:$true] %s676_s18 }
  0x36   : > { %s898_s23 = scalar_lea.vmem %s1187_s18, 256  ;;  %s902_s24 = sshll.u32 %s977_s6, 4  ;;  %s903_s24 = int_to_ptr.vmem [resolvable:$false] %s902_s24 }
  0x37   : > { %p899_p9 = scmp.ne.s32.totalorder %s1187_s18, %s898_s23  ;;  %p905_p13 = scmp.lt.s32.totalorder %s1187_s18, %s903_s24 }
  0x39   : > { %p900_p10 = pnand %p899_p9, %p1061_p5 }
  0x3b   : > { %p901_p12 = pneg %p900_p10 }
  0xab   : > { %v317_v21 = vpop.permute.xlu0 %316 }
 0x103   : > { %v803_v9 = vpop.f32.mrb[0].mxu1 }
 0x104   : > { %v389_v10 = vpop.f32.mrb[0].mxu0  ;;  %505 = vperm.xlu0 %868, %v803_v9   ;;  %483 = vperm.xlu1 %867, %v803_v9   ;;  %v467_v11 = vpop.f32.mrb[1].mxu1 }
 0x105   : > { %v798_v12 = vpop.f32.mrb[1].mxu0  ;;  %v1108_v22 = vadd.f32 %v389_v10, %v317_v21 }
 0x107   : > { %v1114_v26 = vrot.slane %v1108_v22, %v510_v23  ;;  %v489_v28 = vrot.slane %v1108_v22, %v488_v24  ;;  %v1122_v30 = vrot.slane %v1108_v22, %v532_v25  ;;  %v555_v38 = vrot.slane %v1108_v22, %v554_v31 }
 0x108   : > { %871 = vset.pattern.permute.xlu0 %v971_v13  ;;  %869 = vset.pattern.permute.xlu1 %v972_v14  ;;  %v1137_v44 = vrot.slane %v1108_v22, %v576_v36  ;;  %v1145_v52 = vrot.slane %v1108_v22, %v598_v41  ;;  %v621_v63 = vrot.slane %v1108_v22, %v620_v55  ;;  %v649_v23 = vstv %s1159_s9 }
 0x109   : > { %571 = vperm.xlu0 %871, %v803_v9   ;;  %527 = vperm.xlu1 %869, %v803_v9  }
 0x10d   : > { %874 = vset.pattern.permute.xlu0 %v969_v3  ;;  %870 = vset.pattern.permute.xlu1 %v973_v15 }
 0x10e   : > { %549 = vperm.xlu1 %870, %v803_v9   ;;  %478 = vperm.xlu0 %874, %v467_v11  }
 0x112   : > { %872 = vset.pattern.permute.xlu1 %v974_v16  ;;  %877 = vset.pattern.permute.xlu0 %v973_v15  ;;  %v643_v15 = vrot.slane %v1108_v22, %v642_v7 }
 0x113   : > { %593 = vperm.xlu1 %872, %v803_v9   ;;  %545 = vperm.xlu0 %877, %v467_v11  }
 0x117   : > { %873 = vset.pattern.permute.xlu1 %v975_v17  ;;  %880 = vset.pattern.permute.xlu0 %v975_v17 }
 0x118   : > { %615 = vperm.xlu1 %873, %v803_v9   ;;  %611 = vperm.xlu0 %880, %v467_v11  }
 0x11c   : > { %875 = vset.pattern.permute.xlu1 %v970_v8  ;;  %882 = vset.pattern.permute.xlu0 %v976_v18  ;;  %v605_v8 = vstv %s1148_s25  ;;  %s904_s25 = scalar_lea.vmem %s903_s24, 512 }
 0x11d   : > { %501 = vperm.xlu1 %875, %v467_v11   ;;  %637 = vperm.xlu0 %882, %v803_v9   ;;  %p906_p0 = scmp.lt.s32.totalorder %s904_s25, %s898_s23 }
 0x11f   : > { %p907_p1 = por %p906_p0, %p905_p13 }
 0x121   : > { %876 = vset.pattern.permute.xlu1 %v972_v14  ;;  %p908_p2 = pnand %p907_p1, %p901_p12 }
 0x122   : > { %523 = vperm.xlu1 %876, %v467_v11  }
 0x126   : > { %878 = vset.pattern.permute.xlu1 %v971_v13 }
 0x127   : > { %567 = vperm.xlu1 %878, %v467_v11  }
 0x12b   : > { %879 = vset.pattern.permute.xlu1 %v974_v16 }
 0x12c   : > { %589 = vperm.xlu1 %879, %v467_v11  }
 0x130   : > { %881 = vset.pattern.permute.xlu1 %v976_v18 }
 0x131   : > { %633 = vperm.xlu1 %881, %v467_v11   ;;  %v627_v11 = vstv %s1152_s30 }
 0x183   : > { %v506_v27 = vpop.permute.xlu0 %505  ;;  %v484_v29 = vpop.permute.xlu1 %483 }
 0x184   : > { %v513_v32 = vadd.f32 %v1114_v26, %v506_v27  ;;  %v491_v33 = vadd.f32 %v489_v28, %v484_v29 }
 0x186   : > { %v516_v39 = vmax.f32 %v513_v32, 0.0  ;;  %v494_v40 = vmax.f32 %v491_v33, 0.0 }
 0x188   : > { %v572_v34 = vpop.permute.xlu0 %571  ;;  %v528_v35 = vpop.permute.xlu1 %527  ;;  %v519_v50 = vmul.f32 %v517_v42, %v516_v39  ;;  %v497_v51 = vmul.f32 %v495_v43, %v494_v40 }
 0x189   : > { %v535_v37 = vadd.f32 %v1122_v30, %v528_v35  ;;  %v579_v56 = vadd.f32 %v1137_v44, %v572_v34  ;;  %v654_v34 = vstv %s1164_s10 }
 0x18a   : > { %v521_v60 = vadd.f32 %v519_v50, %v497_v51 }
 0x18b   : > { %v538_v45 = vmax.f32 %v535_v37, 0.0  ;;  %v582_v0 = vmax.f32 %v579_v56, 0.0 }
 0x18d   : > { %v550_v46 = vpop.permute.xlu1 %549  ;;  %v479_v47 = vpop.permute.xlu0 %478  ;;  %v541_v57 = vmul.f32 %v539_v48, %v538_v45  ;;  %v585_v10 = vmul.f32 %v583_v2, %v582_v0 }
 0x18e   : > { %v557_v49 = vadd.f32 %v555_v38, %v550_v46  ;;  %v490_v16 = vadd.f32 %v489_v28, %v479_v47 }
 0x18f   : > { %v543_v1 = vadd.f32 %v541_v57, %v521_v60 }
 0x190   : > { %v560_v54 = vmax.f32 %v557_v49, 0.0  ;;  %v493_v29 = vmax.f32 %v490_v16, 0.0 }
 0x192   : > { %v594_v58 = vpop.permute.xlu1 %593  ;;  %v546_v59 = vpop.permute.xlu0 %545  ;;  %v563_v61 = vmul.f32 %v561_v53, %v560_v54 }
 0x193   : > { %v601_v62 = vadd.f32 %v1145_v52, %v594_v58  ;;  %v556_v22 = vadd.f32 %v555_v38, %v546_v59 }
 0x194   : > { %v565_v3 = vadd.f32 %v563_v61, %v543_v1 }
 0x195   : > { %v604_v4 = vmax.f32 %v601_v62, 0.0  ;;  %v559_v40 = vmax.f32 %v556_v22, 0.0 }
 0x196   : > { %v587_v13 = vadd.f32 %v585_v10, %v565_v3 }
 0x197   : > { %v616_v5 = vpop.permute.xlu1 %615  ;;  %v612_v6 = vpop.permute.xlu0 %611  ;;  %v607_v14 = vmul.f32 %v605_v8, %v604_v4 }
 0x198   : > { %v623_v9 = vadd.f32 %v621_v63, %v616_v5  ;;  %v622_v50 = vadd.f32 %v621_v63, %v612_v6 }
 0x199   : > { %v609_v24 = vadd.f32 %v607_v14, %v587_v13 }
 0x19a   : > { %v626_v12 = vmax.f32 %v623_v9, 0.0 }
 0x19c   : > { %v502_v17 = vpop.permute.xlu1 %501  ;;  %v638_v18 = vpop.permute.xlu0 %637  ;;  %v629_v19 = vmul.f32 %v627_v11, %v626_v12 }
 0x19d   : > { %v512_v20 = vadd.f32 %v1114_v26, %v502_v17  ;;  %v645_v21 = vadd.f32 %v643_v15, %v638_v18  ;;  %v496_v26 = vmul.f32 %v495_v43, %v493_v29 }
 0x19e   : > { %v631_v31 = vadd.f32 %v629_v19, %v609_v24 }
 0x19f   : > { %v515_v25 = vmax.f32 %v512_v20, 0.0  ;;  %v648_v27 = vmax.f32 %v645_v21, 0.0 }
 0x1a1   : > { %v651_v32 = vmul.f32 %v649_v23, %v648_v27  ;;  %v524_v33 = vpop.permute.xlu1 %523  ;;  %v518_v28 = vmul.f32 %v517_v42, %v515_v25 }
 0x1a2   : > { %v534_v35 = vadd.f32 %v1122_v30, %v524_v33  ;;  %v562_v30 = vmul.f32 %v561_v53, %v559_v40 }
 0x1a3   : > { %v653_v36 = vadd.f32 %v651_v32, %v631_v31  ;;  %v520_v41 = vadd.f32 %v518_v28, %v496_v26 }
 0x1a4   : > { %v537_v37 = vmax.f32 %v534_v35, 0.0 }
 0x1a5   : > { %v656_v39 = vadd.f32 %v654_v34, %v653_v36 }
 0x1a6   : > { %v540_v45 = vmul.f32 %v539_v48, %v537_v37  ;;  %v568_v46 = vpop.permute.xlu1 %567  ;;  %v625_v48 = vmax.f32 %v622_v50, 0.0 }
 0x1a7   : > { %v658_v47 = vmax.f32 %v656_v39, 0.0  ;;  %v578_v38 = vadd.f32 %v1137_v44, %v568_v46 }
 0x1a8   : > { %v542_v42 = vadd.f32 %v540_v45, %v520_v41  ;;  %v628_v60 = vmul.f32 %v627_v11, %v625_v48 }
 0x1a9   : > { %v581_v49 = vmax.f32 %v578_v38, 0.0  ;;  %661 = vst.msk [vmem:[%s299_s16 + $0x8] sm:$0xff] %vm659_vm2, %v658_v47 }
 0x1aa   : > { %v564_v43 = vadd.f32 %v562_v30, %v542_v42 }
 0x1ab   : > { %v590_v51 = vpop.permute.xlu1 %589  ;;  %v584_v54 = vmul.f32 %v583_v2, %v581_v49 }
 0x1ac   : > { %v600_v55 = vadd.f32 %v1145_v52, %v590_v51 }
 0x1ad   : > { %v586_v57 = vadd.f32 %v584_v54, %v564_v43 }
 0x1ae   : > { %v603_v56 = vmax.f32 %v600_v55, 0.0 }
 0x1b0   : > { %v606_v58 = vmul.f32 %v605_v8, %v603_v56  ;;  %v634_v44 = vpop.permute.xlu1 %633 }
 0x1b1   : > { %v644_v59 = vadd.f32 %v643_v15, %v634_v44 }
 0x1b2   : > { %v608_v61 = vadd.f32 %v606_v58, %v586_v57 }
 0x1b3   : > { %v647_v62 = vmax.f32 %v644_v59, 0.0 }
 0x1b4   : > { %v630_v0 = vadd.f32 %v628_v60, %v608_v61 }
 0x1b5   : > { %v650_v53 = vmul.f32 %v649_v23, %v647_v62 }
 0x1b7   : > { %v652_v63 = vadd.f32 %v650_v53, %v630_v0 }
 0x1b9   : > { %v655_v1 = vadd.f32 %v654_v34, %v652_v63 }
 0x1bb   : > { %v657_v52 = vmax.f32 %v655_v1, 0.0 }
 0x1bd   : > { %660 = vst.msk [vmem:[%s299_s16] sm:$0xff] %vm659_vm2, %v657_v52 }
 0x1be   : > { %911 = shalt.err (!%p908_p2)
}
 0x1bf   : > { %s912_s30 = scalar_lea.hbm %s1185_s21, 256  ;;  %s916_s14 = scalar_lea.hbm %s1240_s7, 512 }
 0x1c0   : > { %p913_p3 = scmp.ne.s32.totalorder %s1185_s21, %s912_s30  ;;  %p917_p8 = scmp.lt.u32.totalorder %s1185_s21, %s1240_s7 }
 0x1c1   : > { %p918_p11 = scmp.lt.u32.totalorder %s916_s14, %s912_s30  ;;  %p920_p10 = scmp.lt.u32.totalorder %s912_s30, %s1185_s21 }
 0x1c2   : > { %p914_p4 = pnand %p913_p3, %p1061_p5 }
 0x1c3   : > { %p919_p9 = por %p918_p11, %p917_p8 }
 0x1c4   : > { %p915_p7 = pneg %p914_p4 }
 0x1c5   : > { %p921_p12 = por %p920_p10, %p919_p9 }
 0x1c7   : > { %p922_p13 = pnand %p921_p12, %p915_p7 }
 0x1c9   : > { %925 = shalt.err (!%p922_p13)
}
 0x1ca   : > { %s978_s17 = smov 128   ;;  %s979_s19 = smov 8  }
 0x1cb   : > { %808 = dma.vmem_to_hbm [thread:$0]  (%p1061_p5), %s1187_s18, 256, %s1185_s21, %s1192_s22, %s978_s17, %s978_s17, %s979_s19  }
 0x1cc PF: > { %p820_p0 = scmp.ge.s32.totalorder %s964_s29, 2  ;;  %s691_s20 = sand.u32 1, %s952_s26  }
 0x1cd   : > { %s692_s23 = scalar_lea.sflag [#allocation4], %s691_s20 }
 0x1ce   : > { %p815_p1 = pnand %p820_p0, %p1065_p6 }
 0x1d0   : > { %947 = dma.done.wait (!%p815_p1), %s692_s23, 256  }
 0x1d1   : > { %949 = vsyncadd (!%p815_p1), %s692_s23, 4294967040  ;;  %p19_p2 = scmp.ge.s32.totalorder %s1048_s8, 4   ;;  %s1244_s26 = smov %s956_s27 }
 0x1d2   : > { %s1245_s27 = smov %s960_s28  ;;  %s1246_s28 = smov %s1059_s11 }
 0x1d3   : > { %s1247_s29 = smov %s1048_s8  ;;  %21 = sbr.rel (!%p19_p2) target bundleno = 6 (0x6), region = 91 }
 0x1da   :  { %697 = vsyncpa [#allocation4], 1 }
 0x1db   :  { %699 = vsyncpa [#allocation4 + $0x1], 1 }
 0x1dc   :  { %700 = vsyncpa [#allocation5], 1 }
 0x1dd   :  { %702 = vsyncpa [#allocation5 + $0x1], 1 }

</bundles_post_ra>
